<compile_context>
chip_gen: v7x
topology: tpu7x:2x2x1
jax: 0.10.0
libtpu: 0.0.40
codegen_flags: <defaults>
</compile_context>

<pallas_src>
import functools

import jax
import jax.numpy as jnp
from jax.experimental import pallas as pl
from jax.experimental.pallas import tpu as pltpu

_EPSILON = 1e-07
_LANES = 128
_SUBLANES = 8            # accumulator rows / reshape granule
_PAD_ROWS = 16           # pad rows to a multiple of 16 (safe for f32 and bf16 tiling)
_MAX_BLOCK_ROWS = 1024   # 1024x128 f32 = 512 KiB/buffer -> ~2 MiB double-buffered
_NCORES = 2              # leading "parallel" grid axis (uses both TCs on v7x)


def _bce_kernel(o_ref, t_ref, out_ref, acc_ref, *, n_valid, block_rows):
    i = pl.program_id(0)          # core-split axis ("parallel")
    j = pl.program_id(1)          # streaming/reduction axis ("arbitrary")

    @pl.when(j == 0)
    def _():
        acc_ref[...] = jnp.zeros_like(acc_ref)

    o = o_ref[...].astype(jnp.float32)
    t = t_ref[...].astype(jnp.float32)

    # Global flat element index of every position in this block; anything >= n_valid
    # (wrapper padding, partial-block overhang, phantom blocks) is masked out.
    blk = i * pl.num_programs(1) + j
    row = jax.lax.broadcasted_iota(jnp.int32, o.shape, 0)
    lane = jax.lax.broadcasted_iota(jnp.int32, o.shape, 1)
    gidx = (blk * block_rows + row) * _LANES + lane
    valid = gidx < n_valid

    # Mask BEFORE the logs so garbage in padded regions can never produce NaN/Inf.
    o = jnp.where(valid, o, 0.5)
    t = jnp.where(valid, t, 0.0)
    o = jnp.clip(o, _EPSILON, 1.0 - _EPSILON)
    loss = -t * jnp.log(o) - (1.0 - t) * jnp.log(1.0 - o)
    loss = jnp.where(valid, loss, 0.0)

    # Lane/sublane-resident partial sum: pure elementwise adds of (8,128) tiles.
    acc_ref[...] += jnp.sum(loss.reshape(-1, _SUBLANES, _LANES), axis=0)

    @pl.when(j == pl.num_programs(1) - 1)
    def _():
        out_ref[...] = acc_ref[...].reshape(1, _SUBLANES, _LANES)


@jax.jit
def bce_loss(output, target):
    """Mean binary cross-entropy, matching the PyTorch module semantics."""
    n = output.size  # static under jit: mean denominator and in-kernel mask bound

    o_flat = output.reshape(-1)   # keep native dtype; cast to f32 inside the kernel
    t_flat = target.reshape(-1)

    tile_elems = _PAD_ROWS * _LANES
    padded = ((n + tile_elems - 1) // tile_elems) * tile_elems
    pad = padded - n
    if pad:
        # Tiny pad (< one 16x128 tile); pad values are irrelevant (masked in-kernel).
        o_flat = jnp.pad(o_flat, (0, pad))
        t_flat = jnp.pad(t_flat, (0, pad))

    rows = padded // _LANES
    block_rows = min(_MAX_BLOCK_ROWS, rows)          # multiple of 16, or full extent
    total_blocks = (rows + block_rows - 1) // block_rows
    inner = (total_blocks + _NCORES - 1) // _NCORES  # blocks per core

    o2 = o_flat.reshape(rows, _LANES)
    t2 = t_flat.reshape(rows, _LANES)

    def in_map(i, j):
        # Clamp so phantom blocks (when total_blocks doesn't split evenly across the
        # parallel axis) re-read a real block; their contribution is masked to zero.
        return (jnp.minimum(i * inner + j, total_blocks - 1), 0)

    kernel = functools.partial(_bce_kernel, n_valid=n, block_rows=block_rows)

    partials = pl.pallas_call(
        kernel,
        out_shape=jax.ShapeDtypeStruct((_NCORES, _SUBLANES, _LANES), jnp.float32),
        grid_spec=pltpu.PrefetchScalarGridSpec(
            num_scalar_prefetch=0,
            grid=(_NCORES, inner),
            in_specs=[
                pl.BlockSpec((block_rows, _LANES), in_map),
                pl.BlockSpec((block_rows, _LANES), in_map),
            ],
            out_specs=pl.BlockSpec((1, _SUBLANES, _LANES), lambda i, j: (i, 0, 0)),
            scratch_shapes=[pltpu.VMEM((_SUBLANES, _LANES), jnp.float32)],
        ),
        compiler_params=pltpu.CompilerParams(
            dimension_semantics=("parallel", "arbitrary"),
        ),
    )(o2, t2)

    # Single cheap cross-lane reduction over the tiny (2, 8, 128) partial-sum slab.
    return (jnp.sum(partials) / jnp.float32(n)).astype(jnp.float32)


if __name__ == "__main__":
    key = jax.random.PRNGKey(0)
    k1, k2 = jax.random.split(key)

    # NCHW-shaped inputs as the PyTorch module would receive (sigmoid probs,
    # binary targets); small shape: (2, 4, 16, 16).
    logits = jax.random.normal(k1, (2, 4, 16, 16), jnp.float32)
    output = jax.nn.sigmoid(logits)
    target = (jax.random.uniform(k2, (2, 4, 16, 16)) > 0.5).astype(jnp.float32)

    loss = bce_loss(output, target)
    jax.block_until_ready(loss)

    # Pure-JAX reference check (same math as the PyTorch forward).
    # NOTE: matches the MADA module's eps-clamping of the *input* (PyTorch's
    # nn.BCELoss instead clamps log at -100; the MADA spec uses eps-clamping).
    o_ref = jnp.clip(output, _EPSILON, 1.0 - _EPSILON)
    ref = jnp.mean(-target * jnp.log(o_ref) - (1.0 - target) * jnp.log(1.0 - o_ref))
    assert jnp.allclose(loss, ref, rtol=1e-5, atol=1e-6), (loss, ref)

    print("KERNEL_OK")
</pallas_src>

<mosaic_0001>
module attributes {stable_mosaic.version = 11 : i64} {
  func.func @_bce_kernel(%arg0: i32, %arg1: i32, %arg2: memref<16x128xf32, #tpu.memory_space<vmem>>, %arg3: memref<16x128xf32, #tpu.memory_space<vmem>>, %arg4: memref<1x8x128xf32, #tpu.memory_space<vmem>>, %arg5: memref<8x128xf32, #tpu.memory_space<vmem>>) attributes {dimension_semantics = [#tpu.dimension_semantics<parallel>, #tpu.dimension_semantics<arbitrary>], iteration_bounds = array<i64: 2, 1>, scalar_prefetch = 0 : i64, scratch_operands = 1 : i64, tpu.core_type = #tpu.core_type<tc>, window_params = [{transform_indices = @transform_0, window_bounds = array<i64: 16, 128>}, {transform_indices = @transform_1, window_bounds = array<i64: 16, 128>}, {transform_indices = @transform_2, window_bounds = array<i64: 1, 8, 128>}]} {
    %c0_i32 = arith.constant 0 : i32
    %0 = arith.cmpi eq, %arg1, %c0_i32 : i32
    %1 = arith.extui %0 : i1 to i32
    %c0_i32_0 = arith.constant 0 : i32
    %2 = arith.cmpi ne, %1, %c0_i32_0 : i32
    scf.if %2 {
      %cst_18 = arith.constant 0.000000e+00 : f32
      %46 = vector.broadcast %cst_18 : f32 to vector<8x128xf32>
      %c0_19 = arith.constant 0 : index
      %c0_20 = arith.constant 0 : index
      %47 = vector.load %arg5[%c0_19, %c0_20] : memref<8x128xf32, #tpu.memory_space<vmem>>, vector<8x128xf32>
      tpu.vector_store %arg5[%c0_19, %c0_20], %46 {strides = array<i32>} : memref<8x128xf32, #tpu.memory_space<vmem>>, vector<8x128xf32>,
    } else {
    }
    %c0 = arith.constant 0 : index
    %c0_1 = arith.constant 0 : index
    %3 = vector.load %arg2[%c0, %c0_1] : memref<16x128xf32, #tpu.memory_space<vmem>>, vector<16x128xf32>
    %c0_2 = arith.constant 0 : index
    %c0_3 = arith.constant 0 : index
    %4 = vector.load %arg3[%c0_2, %c0_3] : memref<16x128xf32, #tpu.memory_space<vmem>>, vector<16x128xf32>
    %c1_i32 = arith.constant 1 : i32
    %5 = arith.muli %arg0, %c1_i32 : i32
    %6 = arith.addi %5, %arg1 : i32
    %7 = tpu.iota {dimensions = array<i32: 0>} : vector<16x128xi32>
    %8 = tpu.iota {dimensions = array<i32: 1>} : vector<16x128xi32>
    %c16_i32 = arith.constant 16 : i32
    %9 = arith.muli %6, %c16_i32 : i32
    %10 = vector.broadcast %9 : i32 to vector<16x128xi32>
    %11 = arith.addi %10, %7 : vector<16x128xi32>
    %c128_i32 = arith.constant 128 : i32
    %12 = vector.broadcast %c128_i32 : i32 to vector<16x128xi32>
    %13 = arith.muli %11, %12 : vector<16x128xi32>
    %14 = arith.addi %13, %8 : vector<16x128xi32>
    %c2048_i32 = arith.constant 2048 : i32
    %15 = vector.broadcast %c2048_i32 : i32 to vector<16x128xi32>
    %16 = arith.cmpi slt, %14, %15 : vector<16x128xi32>
    %cst = arith.constant 5.000000e-01 : f32
    %17 = vector.broadcast %cst : f32 to vector<16x128xf32>
    %18 = arith.select %16, %3, %17 : vector<16x128xi1>, vector<16x128xf32>
    %cst_4 = arith.constant 0.000000e+00 : f32
    %19 = vector.broadcast %cst_4 : f32 to vector<16x128xf32>
    %20 = arith.select %16, %4, %19 : vector<16x128xi1>, vector<16x128xf32>
    %cst_5 = arith.constant 1.000000e-07 : f32
    %cst_6 = arith.constant 0.99999988 : f32
    %21 = vector.broadcast %cst_5 : f32 to vector<16x128xf32>
    %22 = arith.maximumf %21, %18 : vector<16x128xf32>
    %23 = vector.broadcast %cst_6 : f32 to vector<16x128xf32>
    %24 = arith.minimumf %23, %22 : vector<16x128xf32>
    %cst_7 = arith.constant 0.000000e+00 : f32
    %25 = vector.broadcast %cst_7 : f32 to vector<16x128xf32>
    %26 = arith.subf %25, %20 : vector<16x128xf32>
    %27 = math.log %24 : vector<16x128xf32>
    %28 = arith.mulf %26, %27 : vector<16x128xf32>
    %cst_8 = arith.constant 1.000000e+00 : f32
    %29 = vector.broadcast %cst_8 : f32 to vector<16x128xf32>
    %30 = arith.subf %29, %20 : vector<16x128xf32>
    %cst_9 = arith.constant 1.000000e+00 : f32
    %31 = vector.broadcast %cst_9 : f32 to vector<16x128xf32>
    %32 = arith.subf %31, %24 : vector<16x128xf32>
    %33 = math.log %32 : vector<16x128xf32>
    %34 = arith.mulf %30, %33 : vector<16x128xf32>
    %35 = arith.subf %28, %34 : vector<16x128xf32>
    %cst_10 = arith.constant 0.000000e+00 : f32
    %36 = vector.broadcast %cst_10 : f32 to vector<16x128xf32>
    %37 = arith.select %16, %35, %36 : vector<16x128xi1>, vector<16x128xf32>
    %c0_11 = arith.constant 0 : index
    %c0_12 = arith.constant 0 : index
    %38 = vector.load %arg5[%c0_11, %c0_12] : memref<8x128xf32, #tpu.memory_space<vmem>>, vector<8x128xf32>
    %39 = vector.shape_cast %37 : vector<16x128xf32> to vector<2x8x128xf32>
    %cst_13 = arith.constant dense<0.000000e+00> : vector<8x128xf32>
    %40 = vector.multi_reduction <add>, %39, %cst_13 [0] : vector<2x8x128xf32> to vector<8x128xf32>
    %41 = arith.addf %38, %40 : vector<8x128xf32>
    %c0_14 = arith.constant 0 : index
    %c0_15 = arith.constant 0 : index
    %42 = vector.load %arg5[%c0_14, %c0_15] : memref<8x128xf32, #tpu.memory_space<vmem>>, vector<8x128xf32>
    tpu.vector_store %arg5[%c0_14, %c0_15], %41 {strides = array<i32>} : memref<8x128xf32, #tpu.memory_space<vmem>>, vector<8x128xf32>,
    %c0_i32_16 = arith.constant 0 : i32
    %43 = arith.cmpi eq, %arg1, %c0_i32_16 : i32
    %44 = arith.extui %43 : i1 to i32
    %c0_i32_17 = arith.constant 0 : i32
    %45 = arith.cmpi ne, %44, %c0_i32_17 : i32
    scf.if %45 {
      %c0_18 = arith.constant 0 : index
      %c0_19 = arith.constant 0 : index
      %46 = vector.load %arg5[%c0_18, %c0_19] : memref<8x128xf32, #tpu.memory_space<vmem>>, vector<8x128xf32>
      %47 = vector.shape_cast %46 : vector<8x128xf32> to vector<1x8x128xf32>
      %c0_20 = arith.constant 0 : index
      %c0_21 = arith.constant 0 : index
      %c0_22 = arith.constant 0 : index
      %48 = vector.load %arg4[%c0_20, %c0_21, %c0_22] : memref<1x8x128xf32, #tpu.memory_space<vmem>>, vector<1x8x128xf32>
      tpu.vector_store %arg4[%c0_20, %c0_21, %c0_22], %47 {strides = array<i32>} : memref<1x8x128xf32, #tpu.memory_space<vmem>>, vector<1x8x128xf32>,
    } else {
    }
    return
  }
  func.func @transform_0(%arg0: i32, %arg1: i32) -> (i32, i32) {
    %c1_i32 = arith.constant 1 : i32
    %0 = arith.muli %arg0, %c1_i32 : i32
    %1 = arith.addi %0, %arg1 : i32
    %c0_i32 = arith.constant 0 : i32
    %2 = arith.minsi %1, %c0_i32 : i32
    %c0_i32_0 = arith.constant 0 : i32
    %c0_i32_1 = arith.constant 0 : i32
    return %2, %c0_i32_0 : i32, i32
  }
  func.func @transform_1(%arg0: i32, %arg1: i32) -> (i32, i32) {
    %c1_i32 = arith.constant 1 : i32
    %0 = arith.muli %arg0, %c1_i32 : i32
    %1 = arith.addi %0, %arg1 : i32
    %c0_i32 = arith.constant 0 : i32
    %2 = arith.minsi %1, %c0_i32 : i32
    %c0_i32_0 = arith.constant 0 : i32
    %c0_i32_1 = arith.constant 0 : i32
    return %2, %c0_i32_0 : i32, i32
  }
  func.func @transform_2(%arg0: i32, %arg1: i32) -> (i32, i32, i32) {
    %c0_i32 = arith.constant 0 : i32
    %c0_i32_0 = arith.constant 0 : i32
    %c0_i32_1 = arith.constant 0 : i32
    return %arg0, %c0_i32, %c0_i32_0 : i32, i32, i32
  }
}

</mosaic_0001>

<bundles_post_ra>
// kernel: bce_loss.1
= control target key start
LH: loop header
LB: loop body
LE: loop exit
PB: predicated region body
PF: predicated region fallthrough
CT: control target
= control target key end

     0   :  { %s441_s9 = smov 0   ;;  %s443_s10 = smov 0   ;;  %s490_s0 = inlined_call_operand.vmem [shape: f32[16,128], index: 0, kind: input, shape index: {}]   ;;  %s491_s1 = inlined_call_operand.vmem [shape: f32[16,128], index: 1, kind: input, shape index: {}]   ;;  %s492_s2 = inlined_call_operand.vmem [shape: f32[2,8,128], index: 2, kind: output, shape index: {}]  }
   0x1   :  { %s445_s11 = smov 0  }
   0x2 LB: > { %s24_s12 = sadd.s32 1, %s420_s10  ;;  %p361_p0 = scmp.ge.s32.totalorder %s424_s11, 1  ;;  %s424_s11 = sphi %s445_s11, %s12_s11   ;;  %s420_s10 = sphi %s443_s10, %s494_s10   ;;  %s416_s9 = sphi %s441_s9, %s493_s9  }
   0x3   : > { %p26_p1 = scmp.ge.s32.totalorder %s24_s12, 2  ;;  %p160_p2 = scmp.lt.s32.totalorder %s424_s11, 3 }
   0x5   : > { %s496_s12 = smov (%p26_p1, %s24_s12), 0  ;;  %p161_p3 = pnand %p361_p0, %p160_p2 }
   0x6   : > { %p193_p4 = scmp.lt.s32.totalorder (!%p161_p3), %s416_s9, 0  ;;  %v230_v0 = vlaneseq (!%p161_p3)  ;;  %s367_s13 = sshll.u32 (!%p161_p3), %s416_s9, 4 }
   0x7   : > { %164 = sbr.rel (%p161_p3) target bundleno = 52 (0x34), region = 28  ;;  %v236_v2 = vstv (!%p161_p3), %s367_s13  ;;  %p216_p6 = scmp.lt.s32.totalorder (!%p161_p3), %s416_s9, 1 }
   0x8   : > { %v231_v1 = vshrl.u32 (!%p161_p3), %v230_v0, 7  ;;  %v234_v4 = vand.u32 (!%p161_p3), 127, %v230_v0 }
   0xa   : > { %v232_v3 = vadd.s32 (!%p161_p3), 8, %v231_v1  ;;  %v237_v5 = vadd.s32 (!%p161_p3), %v236_v2, %v231_v1 }
   0xc   : > { %v238_v6 = vadd.s32 (!%p161_p3), %v236_v2, %v232_v3  ;;  %v239_v7 = vmul.u32 (!%p161_p3), 128, %v237_v5 }
   0xe   : > { %s194_s14 = scalar_select %p193_p4, %s416_s9, 0  ;;  %v240_v8 = vmul.u32 128, %v238_v6  ;;  %v241_v9 = vadd.s32 %v239_v7, %v234_v4 }
   0xf   : > { %s500_s9 = smov (!%p216_p6, %s416_s9), 1 }
  0x10   : > { %s362_s15 = sshll.u32 %s194_s14, 1  ;;  %v242_v10 = vadd.s32 %v240_v8, %v234_v4  ;;  %vm243_vm0 = vcmp.lt.s32.totalorder %v241_v9, 2048  ;;  %s366_s23 = sshll.u32 %s500_s9, 3 }
  0x11   : > { %p196_p5 = scmp.lt.s32.totalorder %s362_s15, 1  ;;  %s219_s26 = scalar_lea.vmem %s492_s2, %s366_s23 }
  0x12   : > { %vm244_vm1 = vcmp.lt.s32.totalorder %v242_v10, 2048 }
  0x13   : > { %s498_s15 = smov (!%p196_p5, %s362_s15), 1 }
  0x14   : > { %s363_s16 = sshll.u32 %s498_s15, 3 }
  0x15   : > { %s199_s19 = scalar_lea.vmem %s490_s0, %s363_s16  ;;  %s211_s22 = scalar_lea.vmem %s491_s1, %s363_s16 }
  0x16   : > { %v225_v11 = vld [vmem:[%s199_s19] sm:$0xff]  ;;  %v226_v12 = vld [vmem:[%s199_s19 + $0x8] sm:$0xff] }
  0x17   : > { %v245_v13 = vsel %vm243_vm0, %v225_v11, 0.5  ;;  %v246_v14 = vsel %vm244_vm1, %v226_v12, 0.5  ;;  %v227_v21 = vld [vmem:[%s211_s22] sm:$0xff]  ;;  %v228_v22 = vld [vmem:[%s211_s22 + $0x8] sm:$0xff] }
  0x18   : > { %v249_v15 = vmax.f32 %v245_v13, 1e-07  ;;  %v250_v16 = vmax.f32 %v246_v14, 1e-07  ;;  %v247_v23 = vsel %vm243_vm0, %v227_v21, 0.0  ;;  %v248_v24 = vsel %vm244_vm1, %v228_v22, 0.0 }
  0x19   : > { %v253_v25 = vsub.f32 0.0, %v247_v23  ;;  %v254_v27 = vsub.f32 0.0, %v248_v24  ;;  %v261_v30 = vsub.f32 1.0, %v247_v23  ;;  %v262_v33 = vsub.f32 1.0, %v248_v24 }
  0x1a   : > { %v251_v17 = vmin.f32 %v249_v15, 0.9999999  ;;  %v252_v18 = vmin.f32 %v250_v16, 0.9999999 }
  0x1c   : > { %394 = vlog2.f32 %v251_v17  ;;  %v263_v19 = vsub.f32 1.0, %v251_v17  ;;  %v264_v20 = vsub.f32 1.0, %v252_v18 }
  0x1d   : > { %396 = vlog2.f32 %v252_v18 }
  0x1e   : > { %398 = vlog2.f32 %v263_v19 }
  0x1f   : > { %400 = vlog2.f32 %v264_v20 }
  0x26   : > { %v395_v26 = vpop.eup %394 }
  0x27   : > { %v397_v28 = vpop.eup %396  ;;  %v256_v29 = vmul.f32 0.6931472, %v395_v26 }
  0x28   : > { %v399_v31 = vpop.eup %398  ;;  %v258_v32 = vmul.f32 0.6931472, %v397_v28 }
  0x29   : > { %v401_v34 = vpop.eup %400  ;;  %v259_v35 = vmul.f32 %v256_v29, %v253_v25  ;;  %v266_v36 = vmul.f32 0.6931472, %v399_v31 }
  0x2a   : > { %v260_v37 = vmul.f32 %v258_v32, %v254_v27  ;;  %v268_v38 = vmul.f32 0.6931472, %v401_v34 }
  0x2b   : > { %v269_v39 = vmul.f32 %v266_v36, %v261_v30 }
  0x2c   : > { %v270_v40 = vmul.f32 %v268_v38, %v262_v33 }
  0x2d   : > { %v271_v41 = vsub.f32 %v259_v35, %v269_v39 }
  0x2e   : > { %v272_v42 = vsub.f32 %v260_v37, %v270_v40 }
  0x2f   : > { %v273_v43 = vsel %vm243_vm0, %v271_v41, 0.0 }
  0x30   : > { %v274_v44 = vsel %vm244_vm1, %v272_v42, 0.0 }
  0x31   : > { %v276_v45 = vadd.f32 %v274_v44, %v273_v43 }
  0x33   : > { %283 = vst [vmem:[%s219_s26] sm:$0xff] %v276_v45 }
  0x34 PF: > { %s12_s11 = sadd.s32 1, %s424_s11   ;;  %s493_s9 = smov %s420_s10 }
  0x35   : > { %p9_p7 = scmp.ge.s32.totalorder %s12_s11, 4   ;;  %s494_s10 = smov %s496_s12 }
  0x37   :  { %11 = sbr.rel (!%p9_p7) target bundleno = 2 (0x2), region = 69 }

</bundles_post_ra>
